<compile_context>
chip_gen: v7x
topology: tpu7x:2x2x1
jax: 0.10.0
libtpu: 0.0.40
codegen_flags: <defaults>
</compile_context>

<pallas_src>
import jax
import jax.numpy as jnp
from jax.experimental import pallas as pl
from jax.experimental.pallas import tpu as pltpu

NUM_CLASSES = 2
C = NUM_CLASSES + 1  # 3 logit columns: [real0, real1, fake]
LANES = 128


def _gan_logits_kernel(x_ref, o_ref):
    # x_ref: (C, tr, 128) tile -- x_ref[c] is a dense (tr, 128) batch slab.
    r0 = x_ref[0].astype(jnp.float32)
    r1 = x_ref[1].astype(jnp.float32)
    fake = x_ref[2].astype(jnp.float32)

    # Stable logaddexp(r0, r1) = max + log1p(exp(-|r0 - r1|))
    m = jnp.maximum(r0, r1)
    d = jnp.abs(r0 - r1)
    lse = m + jnp.log1p(jnp.exp(-d))

    o_ref[...] = (lse - fake).astype(o_ref.dtype)  # dense (tr, 128) store


def gan_logits(class_logits: jax.Array, *, rows_per_block: int = 2048) -> jax.Array:
    """class_logits: (B, num_classes + 1) -> (B,) gan logits."""
    B, c = class_logits.shape
    assert c == C, "expected num_classes + 1 logit columns"

    # Batch -> (rows, 128 lanes).  Pad the batch up to a lane multiple only
    # (<=127 elements); transpose/pad/reshape is pure layout plumbing that XLA
    # fuses into a single copy feeding the kernel.
    # TODO(synk): have the upstream classifier head emit logits (C, B)-major so
    # this copy fuses into the producer matmul epilogue and disappears.
    b128 = pl.cdiv(B, LANES) * LANES
    n_rows = b128 // LANES
    xt = class_logits.T                                 # (C, B)
    if b128 != B:
        xt = jnp.pad(xt, ((0, 0), (0, b128 - B)))       # (C, b128), zeros discarded
    x3 = xt.reshape(C, n_rows, LANES)                   # free row-major reshape

    # Tile rows of 128 lanes.  Clamp so large batches give >=2 grid steps
    # (v7x megacore) and tr stays a sublane multiple (or the full row count).
    tr = min(rows_per_block, max(8, pl.cdiv(n_rows, 2)))
    tr = min(tr, n_rows)
    if tr != n_rows:
        tr = max(8, (tr // 8) * 8)
    grid = (pl.cdiv(n_rows, tr),)   # last block may run off the end (masked)

    out = pl.pallas_call(
        _gan_logits_kernel,
        out_shape=jax.ShapeDtypeStruct((n_rows, LANES), class_logits.dtype),
        grid=grid,
        in_specs=[pl.BlockSpec((C, tr, LANES), lambda i: (0, i, 0))],
        out_specs=pl.BlockSpec((tr, LANES), lambda i: (i, 0)),
        compiler_params=pltpu.CompilerParams(
            dimension_semantics=("parallel",)),  # shards row-tiles over v7x's 2 TCs
    )(x3)
    return out.reshape(b128)[:B]                        # (B,), matches torch shape


def _reference(class_logits: jax.Array) -> jax.Array:
    real = class_logits[:, :NUM_CLASSES]
    fake = class_logits[:, NUM_CLASSES]
    m = jnp.max(real, axis=1, keepdims=True)
    return jnp.log(jnp.sum(jnp.exp(real - m), axis=1)) + m[:, 0] - fake


if __name__ == "__main__":
    key = jax.random.PRNGKey(0)

    # Small example consistent with the module: batch=8, num_classes+1=3 columns.
    B = 8
    class_logits = jax.random.normal(key, (B, C), dtype=jnp.float32)
    out = jax.block_until_ready(gan_logits(class_logits))
    ref = _reference(class_logits)
    assert out.shape == (B,)
    assert jnp.allclose(out, ref, atol=1e-5, rtol=1e-5), (out, ref)

    # Exercise multiple grid steps + a partial (off-the-end) last block.
    B2 = 5000
    cl2 = jax.random.normal(jax.random.PRNGKey(1), (B2, C), dtype=jnp.float32)
    out2 = jax.block_until_ready(gan_logits(cl2, rows_per_block=16))
    ref2 = _reference(cl2)
    assert out2.shape == (B2,)
    assert jnp.allclose(out2, ref2, atol=1e-5, rtol=1e-5)

    print("KERNEL_OK")
</pallas_src>

<mosaic_0001>
module attributes {stable_mosaic.version = 11 : i64} {
  func.func @_gan_logits_kernel(%arg0: i32, %arg1: memref<3x1x128xf32, #tpu.memory_space<vmem>>, %arg2: memref<1x128xf32, #tpu.memory_space<vmem>>) attributes {dimension_semantics = [#tpu.dimension_semantics<parallel>], iteration_bounds = array<i64: 1>, scalar_prefetch = 0 : i64, scratch_operands = 0 : i64, tpu.core_type = #tpu.core_type<tc>, window_params = [{transform_indices = @transform_0, window_bounds = array<i64: 3, 1, 128>}, {transform_indices = @transform_1, window_bounds = array<i64: 1, 128>}]} {
    %c0 = arith.constant 0 : index
    %c0_0 = arith.constant 0 : index
    %c0_1 = arith.constant 0 : index
    %0 = vector.load %arg1[%c0, %c0_0, %c0_1] : memref<3x1x128xf32, #tpu.memory_space<vmem>>, vector<1x1x128xf32>
    %1 = vector.shape_cast %0 : vector<1x1x128xf32> to vector<1x128xf32>
    %c1 = arith.constant 1 : index
    %c0_2 = arith.constant 0 : index
    %c0_3 = arith.constant 0 : index
    %2 = vector.load %arg1[%c1, %c0_2, %c0_3] : memref<3x1x128xf32, #tpu.memory_space<vmem>>, vector<1x1x128xf32>
    %3 = vector.shape_cast %2 : vector<1x1x128xf32> to vector<1x128xf32>
    %c2 = arith.constant 2 : index
    %c0_4 = arith.constant 0 : index
    %c0_5 = arith.constant 0 : index
    %4 = vector.load %arg1[%c2, %c0_4, %c0_5] : memref<3x1x128xf32, #tpu.memory_space<vmem>>, vector<1x1x128xf32>
    %5 = vector.shape_cast %4 : vector<1x1x128xf32> to vector<1x128xf32>
    %6 = arith.maximumf %1, %3 : vector<1x128xf32>
    %7 = arith.subf %1, %3 : vector<1x128xf32>
    %8 = math.absf %7 : vector<1x128xf32>
    %cst = arith.constant 0.000000e+00 : f32
    %9 = vector.broadcast %cst : f32 to vector<1x128xf32>
    %10 = arith.subf %9, %8 : vector<1x128xf32>
    %11 = math.exp %10 : vector<1x128xf32>
    %12 = math.log1p %11 : vector<1x128xf32>
    %13 = arith.addf %6, %12 : vector<1x128xf32>
    %14 = arith.subf %13, %5 : vector<1x128xf32>
    %c0_6 = arith.constant 0 : index
    %c0_7 = arith.constant 0 : index
    %15 = vector.load %arg2[%c0_6, %c0_7] : memref<1x128xf32, #tpu.memory_space<vmem>>, vector<1x128xf32>
    tpu.vector_store %arg2[%c0_6, %c0_7], %14 {strides = array<i32>} : memref<1x128xf32, #tpu.memory_space<vmem>>, vector<1x128xf32>,
    return
  }
  func.func @transform_0(%arg0: i32) -> (i32, i32, i32) {
    %c0_i32 = arith.constant 0 : i32
    %c0_i32_0 = arith.constant 0 : i32
    %c0_i32_1 = arith.constant 0 : i32
    return %c0_i32, %arg0, %c0_i32_0 : i32, i32, i32
  }
  func.func @transform_1(%arg0: i32) -> (i32, i32) {
    %c0_i32 = arith.constant 0 : i32
    %c0_i32_0 = arith.constant 0 : i32
    return %arg0, %c0_i32 : i32, i32
  }
}

</mosaic_0001>

<bundles_post_ra>
// kernel: tpu_custom_call.1
= control target key start
LH: loop header
LB: loop body
LE: loop exit
PB: predicated region body
PF: predicated region fallthrough
CT: control target
= control target key end

     0   :  { %6 = vsyncpa [#allocation3], 0  ;;  %s155_s0 = inlined_call_operand.hbm [shape: f32[3,1,128], index: 0, kind: input, shape index: {}]   ;;  %s156_s1 = inlined_call_operand.hbm [shape: f32[1,128], index: 1, kind: output, shape index: {}]  }
   0x1   :  { %7 = vsyncpa [#allocation4], 0  ;;  %s117_s6 = smov [#allocation2]   ;;  %s69_s10 = scalar_lea.hbm %s155_s0, 48 }
   0x2   :  { %s13_s7 = sshll.u32 %s117_s6, 4  ;;  %p70_p0 = scmp.ne.s32.totalorder %s155_s0, %s69_s10  ;;  %s14_s7 = int_to_ptr.vmem [resolvable:$true] %s13_s7 }
   0x3   :  { %p73_p1 = scmp.lt.u32.totalorder %s69_s10, %s155_s0 }
   0x5   :  { %p75_p2 = pnand %p73_p1, %p70_p0 }
   0x7   :  { %78 = shalt.err (!%p75_p2)
}
   0x8   :  { %s79_s15 = scalar_lea.vmem %s14_s7, 48  ;;  %s83_s16 = scalar_lea.vmem %s14_s7, 64 }
   0x9   :  { %p80_p3 = scmp.ne.s32.totalorder %s14_s7, %s79_s15  ;;  %p84_p4 = scmp.lt.s32.totalorder %s14_s7, %s14_s7 }
   0xa   :  { %p85_p5 = scmp.lt.s32.totalorder %s83_s16, %s79_s15 }
   0xc   :  { %p86_p6 = por %p85_p5, %p84_p4 }
   0xe   :  { %p87_p7 = pnand %p86_p6, %p80_p3 }
  0x10   :  { %90 = shalt.err (!%p87_p7)
}
  0x11   :  { %s118_s17 = smov 16   ;;  %s119_s18 = smov 1  }
  0x12   :  { %19 = dma.hbm_to_vmem [thread:$0]  %s155_s0, 48, %s14_s7, [#allocation3], %s118_s17, %s118_s17, %s119_s18  }
  0x13   :  { %113 = dma.done.wait [#allocation3], 48  }
  0x14   :  { %114 = vsyncadd [#allocation3], 4294967248  ;;  %v23_v0 = vld [vmem:[#allocation2] sm:$0x1]  ;;  %v25_v1 = vld [vmem:[#allocation2 + $0x1] sm:$0x1] }
  0x15   :  { %v29_v2 = vsub.f32 %v23_v0, %v25_v1  ;;  %v28_v13 = vmax.f32 %v23_v0, %v25_v1  ;;  %v27_v15 = vld [vmem:[#allocation2 + $0x2] sm:$0x1]  ;;  %s120_s0 = smov [#allocation5]  }
  0x16   :  { %s52_s21 = sshll.u32 %s120_s0, 4  ;;  %s53_s21 = int_to_ptr.vmem [resolvable:$true] %s52_s21 }
  0x17   :  { %v30_v3 = vand.u32 2147483647, %v29_v2  ;;  %s91_s22 = scalar_lea.vmem %s53_s21, 16  ;;  %s95_s23 = scalar_lea.vmem %s53_s21, 32 }
  0x18   :  { %p92_p8 = scmp.ne.s32.totalorder %s53_s21, %s91_s22  ;;  %p96_p9 = scmp.lt.s32.totalorder %s53_s21, %s53_s21 }
  0x19   :  { %v31_v4 = vsub.f32 0.0, %v30_v3  ;;  %p97_p10 = scmp.lt.s32.totalorder %s95_s23, %s91_s22 }
  0x1b   :  { %v32_v5 = vmul.f32 1.442695, %v31_v4  ;;  %p98_p11 = por %p97_p10, %p96_p9 }
  0x1d   :  { %65 = vpow2.f32 %v32_v5  ;;  %p99_p12 = pnand %p98_p11, %p92_p8 }
  0x27   :  { %v66_v6 = vpop.eup %65 }
  0x28   :  { %v34_v7 = vadd.f32 1.0, %v66_v6  ;;  %v37_v8 = vmul.f32 -0.5, %v66_v6  ;;  %v40_v10 = vand.u32 2147483647, %v66_v6 }
  0x2a   :  { %67 = vlog2.f32 %v34_v7  ;;  %v38_v9 = vadd.f32 1.0, %v37_v8  ;;  %vm41_vm0 = vcmp.lt.f32.partialorder %v40_v10, 0.0004427343 }
  0x2c   :  { %v39_v11 = vmul.f32 %v66_v6, %v38_v9 }
  0x34   :  { %v68_v12 = vpop.eup %67 }
  0x35   :  { %v36_v14 = vmul.f32 0.6931472, %v68_v12 }
  0x37   :  { %v42_v16 = vsel %vm41_vm0, %v39_v11, %v36_v14 }
  0x38   :  { %v43_v17 = vadd.f32 %v42_v16, %v28_v13 }
  0x3a   :  { %v44_v18 = vsub.f32 %v43_v17, %v27_v15 }
  0x3c   :  { %45 = vst [vmem:[#allocation5] sm:$0x1] %v44_v18 }
  0x3d   :  { %102 = shalt.err (!%p99_p12)
}
  0x3e   :  { %s103_s26 = scalar_lea.hbm %s156_s1, 16 }
  0x3f   :  { %p104_p13 = scmp.ne.s32.totalorder %s156_s1, %s103_s26  ;;  %p107_p0 = scmp.lt.u32.totalorder %s103_s26, %s156_s1 }
  0x41   :  { %p109_p1 = pnand %p107_p0, %p104_p13 }
  0x43   :  { %112 = shalt.err (!%p109_p1)
}
  0x44   :  { %55 = dma.vmem_to_hbm [thread:$0]  %s53_s21, 16, %s156_s1, [#allocation4]  }
  0x45   :  { %115 = dma.done.wait [#allocation4], 16  }
  0x46   :  { %116 = vsyncadd [#allocation4], 4294967280 }
  0x47   :  { %59 = vsyncpa [#allocation3], 1 }
  0x48   :  { %60 = vsyncpa [#allocation4], 1 }

</bundles_post_ra>
